<compile_context>
chip_gen: v7x
topology: tpu7x:2x2x1
jax: 0.10.0
libtpu: 0.0.40
codegen_flags: <defaults>
</compile_context>

<pallas_src>
import jax
import jax.numpy as jnp
from jax.experimental import pallas as pl
from jax.experimental.pallas import tpu as pltpu

LANE = 128
ROW_GRAN = 32                         # sublane granularity (safe for f32/bf16/int8 packing)
_TARGET_BLOCK_BYTES = 4 * 1024 * 1024  # per input per grid step (1-4 MiB sweet spot)
_VMEM_LIMIT = 32 * 1024 * 1024         # ~20 MiB peak use; must raise v5e's 16 MiB default


def _round_down(x, m):
    return (x // m) * m


def _plan_tiles(R, M, itemsize):
    """(tile_rows, tile_cols) for an (R, M) view, ~_TARGET_BLOCK_BYTES per block."""
    T = max(_TARGET_BLOCK_BYTES // itemsize, ROW_GRAN * LANE)   # elements per block
    rows_cap = R if R <= ROW_GRAN else ROW_GRAN
    if M * rows_cap <= T:
        tc = M                                   # full rows fit: no column tiling
    else:
        tc = max(LANE, _round_down(T // rows_cap, LANE))
        if tc >= M:
            tc = M
    tr = T // tc
    if tr >= R:
        tr = R                                   # full dim: no alignment requirement
    else:
        tr = max(ROW_GRAN, _round_down(tr, ROW_GRAN))
    return tr, tc


def _largest_dividing_tile(n, cap):
    """Largest multiple of LANE that divides n (n % LANE == 0) and is <= cap."""
    k = n // LANE
    best = 1
    for d in range(min(k, max(1, cap // LANE)), 0, -1):
        if k % d == 0:
            best = d
            break
    return best * LANE


def _plan_tiles_broadcast(B, HW, itemsize):
    """Tile plan for the (B, C*HW) view; tile_cols must divide HW exactly."""
    T = max(_TARGET_BLOCK_BYTES // itemsize, ROW_GRAN * LANE)
    tr = B if B <= ROW_GRAN else ROW_GRAN
    tc = _largest_dividing_tile(HW, max(LANE, T // tr))
    if B > ROW_GRAN:
        t2 = T // tc
        tr = B if t2 >= B else max(ROW_GRAN, _round_down(t2, ROW_GRAN))
    return tr, tc


def _edge_condition(rows_ragged, cols_ragged):
    conds = []
    if rows_ragged:
        conds.append(pl.program_id(0) == pl.num_programs(0) - 1)
    if cols_ragged:
        conds.append(pl.program_id(1) == pl.num_programs(1) - 1)
    cond = conds[0]
    for extra in conds[1:]:
        cond = jnp.logical_or(cond, extra)
    return cond


def _valid_mask(R, M, tr, tc, rows_ragged, cols_ragged):
    i = pl.program_id(0)
    j = pl.program_id(1)
    valid = None
    if rows_ragged:
        rows = i * tr + jax.lax.broadcasted_iota(jnp.int32, (tr, tc), 0)
        valid = rows < R
    if cols_ragged:
        cols = j * tc + jax.lax.broadcasted_iota(jnp.int32, (tr, tc), 1)
        cvalid = cols < M
        valid = cvalid if valid is None else jnp.logical_and(valid, cvalid)
    return valid


def _make_plain_kernel(R, M, tr, tc, rows_ragged, cols_ragged):
    ragged = rows_ragged or cols_ragged

    def kernel(p_ref, t_ref, loss_ref):
        def emit(edge):
            p = p_ref[...].astype(jnp.float32)
            t = t_ref[...].astype(jnp.float32)
            d = jnp.abs(p - t)
            if edge:
                valid = _valid_mask(R, M, tr, tc, rows_ragged, cols_ragged)
                d = jnp.where(valid, d, 0.0)      # after arithmetic: pad may be NaN/Inf
            # splat the per-tile partial across the lane-dense (8,128) block
            loss_ref[...] = jnp.sum(d) + jnp.zeros_like(loss_ref)

        if not ragged:
            emit(False)
        else:
            is_edge = _edge_condition(rows_ragged, cols_ragged)

            @pl.when(is_edge)
            def _():
                emit(True)

            @pl.when(jnp.logical_not(is_edge))
            def _():
                emit(False)

    return kernel


def _make_masked_kernel(R, M, tr, tc, rows_ragged, cols_ragged):
    ragged = rows_ragged or cols_ragged

    def kernel(p_ref, t_ref, m_ref, loss_ref, cnt_ref):
        c = pl.program_id(2)     # channel step (size 1 unless broadcast-mask path)

        @pl.when(c == 0)
        def _init():
            loss_ref[...] = jnp.zeros_like(loss_ref)

        def emit(edge):
            p = p_ref[...].astype(jnp.float32)
            t = t_ref[...].astype(jnp.float32)
            m = m_ref[...].astype(jnp.float32)
            d = jnp.abs(p - t) * m
            if edge:
                valid = _valid_mask(R, M, tr, tc, rows_ragged, cols_ragged)
                d = jnp.where(valid, d, 0.0)      # after arithmetic: pad may be NaN/Inf
                m = jnp.where(valid, m, 0.0)
            loss_ref[...] += jnp.sum(d)

            # the mask block is identical across the channel grid axis: count once
            @pl.when(c == 0)
            def _count():
                cnt_ref[...] = jnp.sum(m) + jnp.zeros_like(cnt_ref)

        if not ragged:
            emit(False)
        else:
            is_edge = _edge_condition(rows_ragged, cols_ragged)

            @pl.when(is_edge)
            def _():
                emit(True)

            @pl.when(jnp.logical_not(is_edge))
            def _():
                emit(False)

    return kernel


def _as_float(x):
    x = jnp.asarray(x)
    if x.dtype not in (jnp.float32, jnp.bfloat16):
        x = x.astype(jnp.float32)
    return x


def masked_l1_loss(preds, target, mask_valid=None):
    """Pallas implementation of MaskedL1Loss.forward (NCHW inputs)."""
    preds = _as_float(preds)
    target = _as_float(target)
    if preds.shape != target.shape:
        raise ValueError(f"shape mismatch {preds.shape} vs {target.shape}")
    if preds.ndim != 4:
        raise ValueError(f"expected NCHW input, got shape {preds.shape}")
    B, C, H, W = preds.shape
    HW = H * W
    n = preds.size
    itemsize = jnp.dtype(preds.dtype).itemsize

    # ---------------------------------------------------------- no-mask path
    if mask_valid is None:
        R, M = B * C, HW
        tr, tc = _plan_tiles(R, M, itemsize)
        gr, gc = pl.cdiv(R, tr), pl.cdiv(M, tc)
        rows_ragged = (tr < R) and (R % tr != 0)
        cols_ragged = (tc < M) and (M % tc != 0)
        p2 = preds.reshape(R, M)          # free reshape (contiguous)
        t2 = target.reshape(R, M)
        in_spec = pl.BlockSpec((tr, tc), lambda i, j: (i, j))
        out_spec = pl.BlockSpec((1, 1, 8, LANE), lambda i, j: (i, j, 0, 0))
        partials = pl.pallas_call(
            _make_plain_kernel(R, M, tr, tc, rows_ragged, cols_ragged),
            out_shape=jax.ShapeDtypeStruct((gr, gc, 8, LANE), jnp.float32),
            grid=(gr, gc),
            in_specs=[in_spec, in_spec],
            out_specs=out_spec,
            compiler_params=pltpu.CompilerParams(
                dimension_semantics=("parallel", "parallel"),
                vmem_limit_bytes=_VMEM_LIMIT,
            ),
        )(p2, t2)
        return (partials[:, :, 0, 0].sum() / jnp.float32(n)).astype(jnp.float32)

    # ------------------------------------------------------------ mask path
    mask = jnp.asarray(mask_valid)
    if mask.ndim != 4 or mask.shape[0] != B or mask.shape[2:] != (H, W):
        raise ValueError(f"mask shape {mask.shape} incompatible with preds {preds.shape}")
    Cm = mask.shape[1]
    if Cm not in (1, C):
        raise ValueError(
            "mask channel dim must be 1 or equal preds channels "
            "(repeat_interleave would otherwise produce a shape mismatch)")
    mask_i8 = (mask != 0).astype(jnp.int8)   # bool/float -> int8 (1 B/elem of HBM)
    broadcast_c = (Cm == 1) and (C > 1)

    if broadcast_c and (HW % LANE == 0):
        # Fast path: the repeated mask is never materialized. Grid =
        # (batch_tiles, col_tiles, C) with the channel axis innermost; the
        # mask block index ignores the channel coordinate so its VMEM block
        # stays resident across the C inner steps.
        R, M = B, HW
        tr, tc = _plan_tiles_broadcast(B, HW, itemsize)
        gr, gc = pl.cdiv(R, tr), HW // tc
        rows_ragged = (tr < R) and (R % tr != 0)
        cols_ragged = False                       # tc divides HW exactly
        cpc = HW // tc                            # column blocks per channel
        p2 = preds.reshape(B, C * HW)
        t2 = target.reshape(B, C * HW)
        m2 = mask_i8.reshape(B, HW)
        grid = (gr, gc, C)
        pt_spec = pl.BlockSpec((tr, tc), lambda i, j, c: (i, c * cpc + j))
        m_spec = pl.BlockSpec((tr, tc), lambda i, j, c: (i, j))
        cnt_mult = C
    else:
        if broadcast_c:
            # TODO(synk): H*W not a multiple of 128 -> materialize the repeated
            # int8 mask (extra HBM traffic) instead of an in-kernel C-broadcast.
            mask_i8 = jnp.repeat(mask_i8, C, axis=1)
        R, M = B * C, HW
        tr, tc = _plan_tiles(R, M, itemsize)
        gr, gc = pl.cdiv(R, tr), pl.cdiv(M, tc)
        rows_ragged = (tr < R) and (R % tr != 0)
        cols_ragged = (tc < M) and (M % tc != 0)
        p2 = preds.reshape(R, M)
        t2 = target.reshape(R, M)
        m2 = mask_i8.reshape(R, M)
        grid = (gr, gc, 1)
        pt_spec = pl.BlockSpec((tr, tc), lambda i, j, c: (i, j))
        m_spec = pt_spec
        cnt_mult = 1

    out_struct = jax.ShapeDtypeStruct((gr, gc, 8, LANE), jnp.float32)
    out_spec = pl.BlockSpec((1, 1, 8, LANE), lambda i, j, c: (i, j, 0, 0))
    loss_p, cnt_p = pl.pallas_call(
        _make_masked_kernel(R, M, tr, tc, rows_ragged, cols_ragged),
        out_shape=(out_struct, out_struct),
        grid=grid,
        in_specs=[pt_spec, pt_spec, m_spec],
        out_specs=(out_spec, out_spec),
        compiler_params=pltpu.CompilerParams(
            dimension_semantics=("parallel", "parallel", "arbitrary"),
            vmem_limit_bytes=_VMEM_LIMIT,
        ),
    )(p2, t2, m2)

    loss_sum = loss_p[:, :, 0, 0].sum()
    cnt_sum = cnt_p[:, :, 0, 0].sum() * jnp.float32(cnt_mult)
    # NOTE: zero valid elements -> division yields NaN/Inf, same as PyTorch.
    return (loss_sum / cnt_sum).astype(jnp.float32)


if __name__ == "__main__":
    key = jax.random.PRNGKey(0)
    k1, k2, k3, k4 = jax.random.split(key, 4)

    B, C, H, W = 2, 4, 16, 16  # NCHW, same as the PyTorch module
    preds = jax.random.normal(k1, (B, C, H, W), jnp.float32)
    target = jax.random.normal(k2, (B, C, H, W), jnp.float32)

    # 1) single-channel mask -> broadcast (repeat_interleave) fast path
    mask1 = jax.random.bernoulli(k3, 0.7, (B, 1, H, W))
    loss1 = masked_l1_loss(preds, target, mask1)
    jax.block_until_ready(loss1)
    mask1_full = jnp.repeat(mask1, C, axis=1).astype(jnp.float32)
    ref1 = jnp.sum(jnp.abs(preds - target) * mask1_full) / jnp.sum(mask1_full)
    assert jnp.allclose(loss1, ref1, rtol=1e-5, atol=1e-5), (loss1, ref1)

    # 2) full-channel mask -> flat path
    mask2 = jax.random.bernoulli(k4, 0.5, (B, C, H, W))
    loss2 = masked_l1_loss(preds, target, mask2)
    jax.block_until_ready(loss2)
    m2f = mask2.astype(jnp.float32)
    ref2 = jnp.sum(jnp.abs(preds - target) * m2f) / jnp.sum(m2f)
    assert jnp.allclose(loss2, ref2, rtol=1e-5, atol=1e-5), (loss2, ref2)

    # 3) mask_valid=None path (mask input dropped entirely)
    loss3 = masked_l1_loss(preds, target, None)
    jax.block_until_ready(loss3)
    ref3 = jnp.mean(jnp.abs(preds - target))
    assert jnp.allclose(loss3, ref3, rtol=1e-5, atol=1e-5), (loss3, ref3)

    print("KERNEL_OK")
</pallas_src>

<mosaic_0001>
module attributes {stable_mosaic.version = 11 : i64} {
  func.func @kernel(%arg0: i32, %arg1: i32, %arg2: i32, %arg3: memref<2x256xf32, #tpu.memory_space<vmem>>, %arg4: memref<2x256xf32, #tpu.memory_space<vmem>>, %arg5: memref<2x256xi8, #tpu.memory_space<vmem>>, %arg6: memref<1x1x8x128xf32, #tpu.memory_space<vmem>>, %arg7: memref<1x1x8x128xf32, #tpu.memory_space<vmem>>) attributes {dimension_semantics = [#tpu.dimension_semantics<parallel>, #tpu.dimension_semantics<parallel>, #tpu.dimension_semantics<arbitrary>], iteration_bounds = array<i64: 1, 1, 4>, scalar_prefetch = 0 : i64, scratch_operands = 0 : i64, tpu.core_type = #tpu.core_type<tc>, window_params = [{transform_indices = @transform_0, window_bounds = array<i64: 2, 256>}, {transform_indices = @transform_1, window_bounds = array<i64: 2, 256>}, {transform_indices = @transform_2, window_bounds = array<i64: 2, 256>}, {transform_indices = @transform_3, window_bounds = array<i64: 1, 1, 8, 128>}, {transform_indices = @transform_4, window_bounds = array<i64: 1, 1, 8, 128>}]} {
    %c0_i32 = arith.constant 0 : i32
    %0 = arith.cmpi eq, %arg2, %c0_i32 : i32
    %1 = arith.extui %0 : i1 to i32
    %c0_i32_0 = arith.constant 0 : i32
    %2 = arith.cmpi ne, %1, %c0_i32_0 : i32
    scf.if %2 {
      %cst_16 = arith.constant 0.000000e+00 : f32
      %21 = vector.broadcast %cst_16 : f32 to vector<1x1x8x128xf32>
      %c0_17 = arith.constant 0 : index
      %c0_18 = arith.constant 0 : index
      %c0_19 = arith.constant 0 : index
      %c0_20 = arith.constant 0 : index
      %22 = vector.load %arg6[%c0_17, %c0_18, %c0_19, %c0_20] : memref<1x1x8x128xf32, #tpu.memory_space<vmem>>, vector<1x1x8x128xf32>
      tpu.vector_store %arg6[%c0_17, %c0_18, %c0_19, %c0_20], %21 {strides = array<i32>} : memref<1x1x8x128xf32, #tpu.memory_space<vmem>>, vector<1x1x8x128xf32>,
    } else {
    }
    %c0 = arith.constant 0 : index
    %c0_1 = arith.constant 0 : index
    %3 = vector.load %arg3[%c0, %c0_1] : memref<2x256xf32, #tpu.memory_space<vmem>>, vector<2x256xf32>
    %c0_2 = arith.constant 0 : index
    %c0_3 = arith.constant 0 : index
    %4 = vector.load %arg4[%c0_2, %c0_3] : memref<2x256xf32, #tpu.memory_space<vmem>>, vector<2x256xf32>
    %c0_4 = arith.constant 0 : index
    %c0_5 = arith.constant 0 : index
    %5 = vector.load %arg5[%c0_4, %c0_5] : memref<2x256xi8, #tpu.memory_space<vmem>>, vector<2x256xi8>
    %6 = arith.sitofp %5 : vector<2x256xi8> to vector<2x256xf32>
    %7 = arith.subf %3, %4 : vector<2x256xf32>
    %8 = math.absf %7 : vector<2x256xf32>
    %9 = arith.mulf %8, %6 : vector<2x256xf32>
    %c0_6 = arith.constant 0 : index
    %c0_7 = arith.constant 0 : index
    %c0_8 = arith.constant 0 : index
    %c0_9 = arith.constant 0 : index
    %10 = vector.load %arg6[%c0_6, %c0_7, %c0_8, %c0_9] : memref<1x1x8x128xf32, #tpu.memory_space<vmem>>, vector<1x1x8x128xf32>
    %11 = vector.shape_cast %9 : vector<2x256xf32> to vector<1x2x256xf32>
    %cst = arith.constant dense<0.000000e+00> : vector<1xf32>
    %12 = vector.multi_reduction <add>, %11, %cst [1, 2] : vector<1x2x256xf32> to vector<1xf32>
    %13 = vector.shape_cast %12 : vector<1xf32> to vector<1x1x1xf32>
    %14 = vector.extract %13[0, 0, 0] : f32 from vector<1x1x1xf32>
    %15 = vector.broadcast %14 : f32 to vector<1x1x8x128xf32>
    %16 = arith.addf %10, %15 : vector<1x1x8x128xf32>
    %c0_10 = arith.constant 0 : index
    %c0_11 = arith.constant 0 : index
    %c0_12 = arith.constant 0 : index
    %c0_13 = arith.constant 0 : index
    %17 = vector.load %arg6[%c0_10, %c0_11, %c0_12, %c0_13] : memref<1x1x8x128xf32, #tpu.memory_space<vmem>>, vector<1x1x8x128xf32>
    tpu.vector_store %arg6[%c0_10, %c0_11, %c0_12, %c0_13], %16 {strides = array<i32>} : memref<1x1x8x128xf32, #tpu.memory_space<vmem>>, vector<1x1x8x128xf32>,
    %c0_i32_14 = arith.constant 0 : i32
    %18 = arith.cmpi eq, %arg2, %c0_i32_14 : i32
    %19 = arith.extui %18 : i1 to i32
    %c0_i32_15 = arith.constant 0 : i32
    %20 = arith.cmpi ne, %19, %c0_i32_15 : i32
    scf.if %20 {
      %21 = vector.shape_cast %6 : vector<2x256xf32> to vector<1x2x256xf32>
      %cst_16 = arith.constant dense<0.000000e+00> : vector<1xf32>
      %22 = vector.multi_reduction <add>, %21, %cst_16 [1, 2] : vector<1x2x256xf32> to vector<1xf32>
      %23 = vector.shape_cast %22 : vector<1xf32> to vector<1x1x1xf32>
      %24 = vector.extract %23[0, 0, 0] : f32 from vector<1x1x1xf32>
      %cst_17 = arith.constant 0.000000e+00 : f32
      %25 = vector.broadcast %cst_17 : f32 to vector<1x1x8x128xf32>
      %26 = vector.broadcast %24 : f32 to vector<1x1x8x128xf32>
      %27 = arith.addf %26, %25 : vector<1x1x8x128xf32>
      %c0_18 = arith.constant 0 : index
      %c0_19 = arith.constant 0 : index
      %c0_20 = arith.constant 0 : index
      %c0_21 = arith.constant 0 : index
      %28 = vector.load %arg7[%c0_18, %c0_19, %c0_20, %c0_21] : memref<1x1x8x128xf32, #tpu.memory_space<vmem>>, vector<1x1x8x128xf32>
      tpu.vector_store %arg7[%c0_18, %c0_19, %c0_20, %c0_21], %27 {strides = array<i32>} : memref<1x1x8x128xf32, #tpu.memory_space<vmem>>, vector<1x1x8x128xf32>,
    } else {
    }
    return
  }
  func.func @transform_0(%arg0: i32, %arg1: i32, %arg2: i32) -> (i32, i32) {
    %c1_i32 = arith.constant 1 : i32
    %0 = arith.muli %arg2, %c1_i32 : i32
    %1 = arith.addi %0, %arg1 : i32
    %c0_i32 = arith.constant 0 : i32
    return %arg0, %1 : i32, i32
  }
  func.func @transform_1(%arg0: i32, %arg1: i32, %arg2: i32) -> (i32, i32) {
    %c1_i32 = arith.constant 1 : i32
    %0 = arith.muli %arg2, %c1_i32 : i32
    %1 = arith.addi %0, %arg1 : i32
    %c0_i32 = arith.constant 0 : i32
    return %arg0, %1 : i32, i32
  }
  func.func @transform_2(%arg0: i32, %arg1: i32, %arg2: i32) -> (i32, i32) {
    %c0_i32 = arith.constant 0 : i32
    return %arg0, %arg1 : i32, i32
  }
  func.func @transform_3(%arg0: i32, %arg1: i32, %arg2: i32) -> (i32, i32, i32, i32) {
    %c0_i32 = arith.constant 0 : i32
    %c0_i32_0 = arith.constant 0 : i32
    %c0_i32_1 = arith.constant 0 : i32
    return %arg0, %arg1, %c0_i32, %c0_i32_0 : i32, i32, i32, i32
  }
  func.func @transform_4(%arg0: i32, %arg1: i32, %arg2: i32) -> (i32, i32, i32, i32) {
    %c0_i32 = arith.constant 0 : i32
    %c0_i32_0 = arith.constant 0 : i32
    %c0_i32_1 = arith.constant 0 : i32
    return %arg0, %arg1, %c0_i32, %c0_i32_0 : i32, i32, i32, i32
  }
}

</mosaic_0001>

<bundles_post_ra>
// kernel: tpu_custom_call.1
= control target key start
LH: loop header
LB: loop body
LE: loop exit
PB: predicated region body
PF: predicated region fallthrough
CT: control target
= control target key end

     0   :  { %10 = vsyncpa [#allocation3], 0  ;;  %s1093_s0 = inlined_call_operand.hbm [shape: f32[2,1024], index: 0, kind: input, shape index: {}]   ;;  %s1094_s1 = inlined_call_operand.hbm [shape: f32[2,1024], index: 1, kind: input, shape index: {}]   ;;  %s1095_s2 = inlined_call_operand.vmem [shape: s8[2,256], index: 2, kind: input, shape index: {}]   ;;  %s1096_s3 = inlined_call_operand.hbm [shape: f32[1,1,8,128], index: 3, kind: output, shape index: {0}]   ;;  %s1097_s4 = inlined_call_operand.hbm [shape: f32[1,1,8,128], index: 4, kind: output, shape index: {1}]  }
   0x1   :  { %12 = vsyncpa [#allocation3 + $0x1], 0 }
   0x2   :  { %13 = vsyncpa [#allocation6], 0 }
   0x3   :  { %15 = vsyncpa [#allocation6 + $0x1], 0 }
   0x4   :  { %16 = vsyncpa [#allocation4], 0 }
   0x5   :  { %17 = vsyncpa [#allocation9], 0  ;;  %s855_s15 = smov 0   ;;  %s857_s16 = smov 0  }
   0x6   :  { %s859_s17 = smov 0   ;;  %s861_s18 = smov 0  }
   0x7   :  { %s863_s19 = smov 0   ;;  %s865_s20 = smov 0  }
   0x8 LB: > { %s545_s21 = sadd.s32 4294967295, %s822_s20   ;;  %s35_s22 = sadd.s32 1, %s818_s19  ;;  %s822_s20 = sphi %s865_s20, %s23_s20   ;;  %s818_s19 = sphi %s863_s19, %s1112_s19   ;;  %s814_s18 = sphi %s861_s18, %s1111_s18   ;;  %s810_s17 = sphi %s859_s17, %s1110_s17   ;;  %s806_s16 = sphi %s857_s16, %s1109_s16   ;;  %s802_s15 = sphi %s855_s15, %s1108_s15  }
   0x9   : > { %p36_p0 = scmp.ge.s32.totalorder %s35_s22, 4  ;;  %s53_s23 = sadd.s32 1, %s810_s17 }
   0xa   : > { %p60_p1 = scmp.ne.s32.totalorder %s810_s17, %s806_s16  ;;  %p61_p2 = scmp.eq.s32.totalorder %s822_s20, 0 }
   0xb   : > { %s1114_s22 = smov (%p36_p0, %s35_s22), 0  ;;  %p66_p4 = scmp.ne.s32.totalorder %s806_s16, %s802_s15 }
   0xc   : > { %p891_p3 = por %p61_p2, %p60_p1  ;;  %s49_s25 = ssub.s32 %s818_s19, %s1114_s22 }
   0xd   : > { %p67_p5 = scmp.eq.s32.totalorder %s545_s21, 0  ;;  %p51_p6 = scmp.eq.s32.totalorder %s49_s25, 0 }
   0xe   : > { %p591_p8 = scmp.lt.s32.totalorder %s822_s20, 4  ;;  %s909_s28 = sand.u32 1, %s810_s17  }
   0xf   : > { %p900_p7 = por %p67_p5, %p66_p4  ;;  %s566_s29 = sshll.u32 %s818_s19, 6 }
  0x10   : > { %s906_s27 = scalar_select %p51_p6, %s810_s17, %s53_s23  }
  0x11   : > { %s1100_s26 = scalar_select %p900_p7, 1, 0 }
  0x12   : > { %s549_s30 = sshll.u32 %s909_s28, 2  ;;  %s918_s7 = scalar_lea.hbm %s1093_s0, %s566_s29 }
  0x13   : > { %s220_s8 = scalar_lea.vmem [#allocation2], %s549_s30  ;;  %p924_p9 = pnand %p591_p8, %p891_p3 }
  0x14   : > { %s231_s9 = sshll.u32 %s220_s8, 4  ;;  %s217_s11 = scalar_lea.sflag [#allocation3], %s909_s28  ;;  %s928_s9 = int_to_ptr.vmem [resolvable:$true] %s231_s9 }
  0x15   : > { %s648_s12 = scalar_lea.hbm %s918_s7, 64  ;;  %p650_p13 = pneg %p924_p9 }
  0x16   : > { %p649_p12 = scmp.ne.s32.totalorder %s918_s7, %s648_s12  ;;  %s653_s15 = scalar_lea.hbm %s1093_s0, 256 }
  0x17   : > { %p654_p2 = scmp.lt.u32.totalorder %s918_s7, %s1093_s0  ;;  %p655_p3 = scmp.lt.u32.totalorder %s653_s15, %s648_s12 }
  0x18   : > { %p651_p0 = pnand %p650_p13, %p649_p12  ;;  %p657_p5 = scmp.lt.u32.totalorder %s648_s12, %s918_s7 }
  0x19   : > { %p656_p4 = por %p655_p3, %p654_p2 }
  0x1a   : > { %p652_p1 = pneg %p651_p0 }
  0x1b   : > { %p658_p6 = por %p657_p5, %p656_p4 }
  0x1d   : > { %p659_p8 = pnand %p658_p6, %p652_p1 }
  0x1f   : > { %662 = shalt.err (!%p659_p8)
}
  0x20   : > { %s663_s25 = scalar_lea.vmem %s928_s9, 64  ;;  %s824_s5 = smov [#allocation2]  }
  0x21   : > { %p664_p12 = scmp.ne.s32.totalorder %s928_s9, %s663_s25  ;;  %s668_s6 = sshll.u32 %s824_s5, 4  ;;  %s669_s6 = int_to_ptr.vmem [resolvable:$false] %s668_s6 }
  0x22   : > { %s670_s8 = scalar_lea.vmem %s669_s6, 128  ;;  %p671_p11 = scmp.lt.s32.totalorder %s928_s9, %s669_s6 }
  0x23   : > { %p666_p0 = pnand %p664_p12, %p650_p13  ;;  %p672_p2 = scmp.lt.s32.totalorder %s670_s8, %s663_s25 }
  0x25   : > { %p667_p10 = pneg %p666_p0  ;;  %p673_p3 = por %p672_p2, %p671_p11 }
  0x27   : > { %p674_p4 = pnand %p673_p3, %p667_p10 }
  0x29   : > { %677 = shalt.err (!%p674_p4)
}
  0x2a   : > { %587 = dma.hbm_to_vmem [thread:$0]  (!%p924_p9), %s918_s7, 64, %s928_s9, %s217_s11  }
  0x2b   : > { %p1102_p1 = scmp.lt.s32.totalorder %s822_s20, 5  ;;  %p1103_p5 = scmp.ge.s32.totalorder %s822_s20, 1 }
  0x2c   : > { %s971_s15 = scalar_lea.hbm %s1094_s1, %s566_s29  ;;  %s242_s23 = scalar_lea.vmem [#allocation5], %s549_s30 }
  0x2d   : > { %p962_p6 = pnand %p1103_p5, %p1102_p1  ;;  %s253_s24 = sshll.u32 %s242_s23, 4  ;;  %s254_s24 = int_to_ptr.vmem [resolvable:$true] %s253_s24 }
  0x2e   : > { %s239_s7 = scalar_lea.sflag [#allocation6], %s909_s28  ;;  %s678_s9 = scalar_lea.hbm %s971_s15, 64 }
  0x2f   : > { %s1104_s12 = scalar_select %p962_p6, 1, 0 }
  0x30   : > { %p679_p10 = scmp.ne.s32.totalorder %s971_s15, %s678_s9  ;;  %s683_s29 = scalar_lea.hbm %s1094_s1, 256 }
  0x31   : > { %p684_p12 = scmp.lt.u32.totalorder %s971_s15, %s1094_s1  ;;  %p685_p0 = scmp.lt.u32.totalorder %s683_s29, %s678_s9 }
  0x32   : > { %p681_p11 = pnand %p679_p10, %p650_p13  ;;  %p687_p3 = scmp.lt.u32.totalorder %s678_s9, %s971_s15 }
  0x33   : > { %p686_p2 = por %p685_p0, %p684_p12 }
  0x34   : > { %p682_p8 = pneg %p681_p11 }
  0x35   : > { %p688_p4 = por %p687_p3, %p686_p2 }
  0x37   : > { %p689_p1 = pnand %p688_p4, %p682_p8 }
  0x39   : > { %692 = shalt.err (!%p689_p1)
}
  0x3a   : > { %s693_s28 = scalar_lea.vmem %s254_s24, 64  ;;  %s825_s30 = smov [#allocation5]  }
  0x3b   : > { %p694_p5 = scmp.ne.s32.totalorder %s254_s24, %s693_s28  ;;  %s698_s8 = sshll.u32 %s825_s30, 4  ;;  %s699_s8 = int_to_ptr.vmem [resolvable:$false] %s698_s8 }
  0x3c   : > { %s700_s13 = scalar_lea.vmem %s699_s8, 128  ;;  %p701_p7 = scmp.lt.s32.totalorder %s254_s24, %s699_s8 }
  0x3d   : > { %p696_p10 = pnand %p694_p5, %p650_p13  ;;  %p702_p6 = scmp.lt.s32.totalorder %s700_s13, %s693_s28 }
  0x3f   : > { %p697_p11 = pneg %p696_p10  ;;  %p703_p0 = por %p702_p6, %p701_p7 }
  0x41   : > { %p704_p12 = pnand %p703_p0, %p697_p11 }
  0x43   : > { %707 = shalt.err (!%p704_p12)
}
  0x44   : > { %590 = dma.hbm_to_vmem [thread:$0]  (!%p924_p9), %s971_s15, 64, %s254_s24, %s239_s7  }
  0x45   : > { %p1105_p8 = scmp.ne.s32.totalorder %s1104_s12, 0 }
  0x46   : > { %s264_s14 = sand.u32 (!%p1105_p8), 1, %s806_s16   ;;  %p1106_p13 = scmp.ne.s32.totalorder (!%p1105_p8), %s1100_s26, 0 }
  0x47   : > { %262 = sbr.rel (%p1105_p8) target bundleno = 366 (0x16e), region = 32  ;;  %s556_s23 = sshll.u32 (!%p1105_p8), %s264_s14, 2 }
  0x48   : > { %s265_s9 = scalar_lea.sflag (!%p1105_p8), [#allocation3], %s264_s14  ;;  %s268_s11 = scalar_lea.vmem (!%p1105_p8), [#allocation2], %s556_s23 }
  0x4e   : > { %785 = dma.done.wait (%p1106_p13), %s265_s9, 64  }
  0x4f   : > { %787 = vsyncadd (%p1106_p13), %s265_s9, 4294967232  ;;  %s274_s25 = scalar_lea.sflag [#allocation6], %s264_s14  ;;  %s277_s29 = scalar_lea.vmem [#allocation5], %s556_s23 }
  0x50   : > { %789 = dma.done.wait (%p1106_p13), %s274_s25, 64  }
  0x51   : > { %791 = vsyncadd (%p1106_p13), %s274_s25, 4294967232  ;;  %p558_p7 = scmp.ne.s32.totalorder %s814_s18, 0 }
  0x52   : > { %v826_v0 = vmov (!%p558_p7), 0.0  }
  0x53   : > { %326 = sbr.rel (%p558_p7) target bundleno = 90 (0x5a), region = 44  ;;  %327 = vst [vmem:[#allocation7] sm:$0xff] (!%p558_p7), %v826_v0 }
  0x5a PF: > { %v328_v1 = vld [vmem:[%s268_s11] sm:$0xf]  ;;  %v329_v2 = vld [vmem:[%s277_s29] sm:$0xf]  ;;  %v339_v4 = vlaneseq  ;;  %v827_v7 = vmov 1983009808  }
  0x5b   : > { %v330_v3 = vld [vmem:[%s1095_s2] sm:$0x3]  ;;  %v333_v6 = vsub.f32 %v328_v1, %v329_v2  ;;  %v337_v8 = vunpack.c.l.s4 %v827_v7  ;;  %vm357_vm0 = vcmask 1041408   ;;  %v345_v28 = vld [vmem:[#allocation7] sm:$0xff] }
  0x5c   : > { %v331_v5 = vunpack.c.0.s8 %v330_v3  ;;  %v340_v9 = vshrl.u32 %v339_v4, 7 }
  0x5d   : > { %v338_v11 = vunpack.c.0.s8 %v337_v8  ;;  %v334_v12 = vand.u32 2147483647, %v333_v6 }
  0x5e   : > { %v332_v10 = vcvt.s32.f32 %v331_v5 }
  0x5f   : > { %v341_v13 = vsub.s32 %v338_v11, %v340_v9 }
  0x60   : > { %v376_v31 = vcombine.high (!%p558_p7), %v332_v10, %v332_v10  ;;  %v378_v32 = vsel (!%p558_p7), %vm357_vm0, %v332_v10, 0.0 }
  0x61   : > { %v342_v14 = vrot.slane %v332_v10, %v341_v13 }
  0x62   : > { %v379_v33 = vsel (!%p558_p7), %vm357_vm0, %v376_v31, 0.0 }
  0x63   : > { %v344_v15 = vmul.f32 %v342_v14, %v334_v12  ;;  %v380_v34 = vadd.f32 (!%p558_p7), %v379_v33, %v378_v32 }
  0x65   : > { %v353_v16 = vrot.slane %v344_v15, %v341_v13 }
  0x67   : > { %v354_v17 = vcombine.high %v353_v16, %v353_v16  ;;  %v358_v18 = vsel %vm357_vm0, %v353_v16, 0.0 }
  0x69   : > { %v359_v19 = vsel %vm357_vm0, %v354_v17, 0.0 }
  0x6a   : > { %v360_v20 = vadd.f32 %v359_v19, %v358_v18 }
  0x6c   : > { %361 = vadd.xlane.f32.xlu0 %v360_v20 }
  0x70   : > { %381 = vadd.xlane.f32.xlu0 (!%p558_p7), %v380_v34 }
  0xf9   : > { %v362_v21 = vpop.xlane.xlu0 %361 }
  0xfa   : > { %v363_v22 = vrot.slane %v362_v21, 4 }
  0xfc   : > { %v364_v23 = vadd.f32 %v363_v22, %v362_v21 }
  0xfd   : > { %v382_v35 = vpop.xlane.xlu0 (!%p558_p7), %381 }
  0xfe   : > { %v365_v24 = vrot.slane %v364_v23, 2  ;;  %v383_v36 = vrot.slane (!%p558_p7), %v382_v35, 4 }
 0x100   : > { %v366_v25 = vadd.f32 %v365_v24, %v364_v23  ;;  %v384_v37 = vadd.f32 (!%p558_p7), %v383_v36, %v382_v35 }
 0x102   : > { %v367_v26 = vrot.slane %v366_v25, 1  ;;  %v385_v38 = vrot.slane (!%p558_p7), %v384_v37, 2 }
 0x104   : > { %v368_v27 = vadd.f32 %v367_v26, %v366_v25  ;;  %v386_v39 = vadd.f32 (!%p558_p7), %v385_v38, %v384_v37 }
 0x106   : > { %568 = vpush %v368_v27  ;;  %v387_v40 = vrot.slane (!%p558_p7), %v386_v39, 1 }
 0x108   : > { %v388_v41 = vadd.f32 (!%p558_p7), %v387_v40, %v386_v39 }
 0x10a   : > { %570 = vpush (!%p558_p7), %v388_v41 }
 0x135   : > { %375 = sbr.rel (%p558_p7) target bundleno = 318 (0x13e), region = 48 }
 0x137   : > { %s569_s26 = spop %568 }
 0x138   : > { %v370_v29 = vstv %s569_s26 }
 0x139   : > { %v371_v30 = vadd.f32 %v370_v29, %v345_v28 }
 0x13b   : > { %372 = vst [vmem:[#allocation7] sm:$0xff] %v371_v30  ;;  %s571_s15 = spop (!%p558_p7), %570 }
 0x13c   : > { %v390_v42 = vstv %s571_s15 }
 0x13d   : > { %392 = vst [vmem:[#allocation8] sm:$0xff] %v390_v42 }
 0x13e PF: > { %p1020_p9 = scmp.eq.s32.totalorder %s545_s21, 3  ;;  %s828_s24 = smov [#allocation7]  }
 0x13f   : > { %s403_s7 = sshll.u32 %s828_s24, 4  ;;  %s829_s5 = smov [#allocation8]   ;;  %s404_s7 = int_to_ptr.vmem [resolvable:$true] %s403_s7 }
 0x140   : > { %s417_s6 = sshll.u32 %s829_s5, 4  ;;  %s708_s28 = scalar_lea.vmem %s404_s7, 128  ;;  %s1024_s6 = int_to_ptr.vmem [resolvable:$true] %s417_s6 }
 0x141   : > { %p709_p6 = scmp.ne.s32.totalorder %s404_s7, %s708_s28  ;;  %p715_p4 = scmp.lt.s32.totalorder %s404_s7, %s404_s7 }
 0x142   : > { %p716_p1 = scmp.lt.s32.totalorder %s708_s28, %s708_s28 }
 0x143   : > { %p710_p2 = pnand %p709_p6, %p1020_p9 }
 0x144   : > { %p717_p5 = por %p716_p1, %p715_p4 }
 0x145   : > { %p711_p3 = pneg %p710_p2 }
 0x147   : > { %p718_p10 = pnand %p717_p5, %p711_p3 }
 0x149   : > { %721 = shalt.err (!%p718_p10)
}
 0x14a   : > { %s722_s8 = scalar_lea.hbm %s1096_s3, 128 }
 0x14b   : > { %p723_p11 = scmp.ne.s32.totalorder %s1096_s3, %s722_s8  ;;  %p728_p8 = scmp.lt.u32.totalorder %s722_s8, %s1096_s3 }
 0x14d   : > { %p724_p0 = pnand %p723_p11, %p1020_p9 }
 0x14f   : > { %p725_p12 = pneg %p724_p0 }
 0x151   : > { %p730_p13 = pnand %p728_p8, %p725_p12 }
 0x153   : > { %733 = shalt.err (!%p730_p13)
}
 0x154   : > { %577 = dma.vmem_to_hbm [thread:$0]  (%p1020_p9), %s404_s7, 128, %s1096_s3, [#allocation4]  }
 0x155   : > { %s734_s29 = scalar_lea.vmem %s1024_s6, 128  ;;  %p741_p3 = scmp.lt.s32.totalorder %s1024_s6, %s1024_s6 }
 0x156   : > { %p735_p7 = scmp.ne.s32.totalorder %s1024_s6, %s734_s29  ;;  %p742_p4 = scmp.lt.s32.totalorder %s734_s29, %s734_s29 }
 0x158   : > { %p736_p6 = pnand %p735_p7, %p1020_p9  ;;  %p743_p1 = por %p742_p4, %p741_p3 }
 0x15a   : > { %p737_p2 = pneg %p736_p6 }
 0x15c   : > { %p744_p5 = pnand %p743_p1, %p737_p2 }
 0x15e   : > { %747 = shalt.err (!%p744_p5)
}
 0x15f   : > { %s748_s26 = scalar_lea.hbm %s1097_s4, 128 }
 0x160   : > { %p749_p10 = scmp.ne.s32.totalorder %s1097_s4, %s748_s26  ;;  %p754_p12 = scmp.lt.u32.totalorder %s748_s26, %s1097_s4 }
 0x162   : > { %p750_p11 = pnand %p749_p10, %p1020_p9 }
 0x164   : > { %p751_p0 = pneg %p750_p11 }
 0x166   : > { %p756_p8 = pnand %p754_p12, %p751_p0 }
 0x168   : > { %759 = shalt.err (!%p756_p8)
}
 0x169   : > { %579 = dma.vmem_to_hbm [thread:$0]  (%p1020_p9), %s1024_s6, 128, %s1097_s4, [#allocation9]  }
 0x16a   : > { %793 = dma.done.wait (%p1020_p9), [#allocation4], 128  }
 0x16b   : > { %795 = vsyncadd (%p1020_p9), [#allocation4], 4294967168 }
 0x16c   : > { %797 = dma.done.wait (%p1020_p9), [#allocation9], 128  }
 0x16d   : > { %799 = vsyncadd (%p1020_p9), [#allocation9], 4294967168 }
 0x16e PF: > { %s23_s20 = sadd.s32 1, %s822_s20   ;;  %s1108_s15 = smov %s806_s16 }
 0x16f   : > { %p20_p13 = scmp.ge.s32.totalorder %s23_s20, 6   ;;  %s1109_s16 = smov %s810_s17 }
 0x170   : > { %s1110_s17 = smov %s906_s27  ;;  %s1111_s18 = smov %s818_s19 }
 0x171   : > { %s1112_s19 = smov %s1114_s22  ;;  %22 = sbr.rel (!%p20_p13) target bundleno = 8 (0x8), region = 103 }
 0x178   :  { %434 = vsyncpa [#allocation3], 1 }
 0x179   :  { %436 = vsyncpa [#allocation3 + $0x1], 1 }
 0x17a   :  { %437 = vsyncpa [#allocation6], 1 }
 0x17b   :  { %439 = vsyncpa [#allocation6 + $0x1], 1 }
 0x17c   :  { %440 = vsyncpa [#allocation4], 1 }
 0x17d   :  { %442 = vsyncpa [#allocation4 + $0x1], 1 }
 0x17e   :  { %443 = vsyncpa [#allocation9], 1 }

</bundles_post_ra>
